<compile_context>
chip_gen: v7x
topology: tpu7x:2x2x1
jax: 0.10.0
libtpu: 0.0.40
codegen_flags: <defaults>
</compile_context>

<pallas_src>
import functools

import jax
import jax.numpy as jnp
from jax.experimental import pallas as pl
from jax.experimental.pallas import tpu as pltpu


def _lp_norm_kernel(x_ref, o_ref, *, p: float, seg):
    # x_ref / o_ref: (tile_rows, width) blocks in VMEM.  Rows are independent, so
    # garbage rows in a ragged last block are harmless (never written back).
    x = x_ref[...]
    xf = x.astype(jnp.float32)  # reduction in f32 for accuracy

    # |x|^p
    if p == 1.0:
        pw = jnp.abs(xf)
    elif p == 2.0:
        pw = xf * xf
    elif float(p).is_integer() and 2.0 < p <= 4.0:
        # Small integer powers as repeated multiplies: stays on the VPU instead
        # of two EUP transcendentals (exp/log) per element.
        ax = jnp.abs(xf)
        pw = ax
        for _ in range(int(p) - 1):
            pw = pw * ax
    else:
        pw = jnp.abs(xf) ** p

    if seg is None:
        # One norm per row (XLU cross-lane reduce).
        s = jnp.sum(pw, axis=-1, keepdims=True)                     # (tr, 1)
    else:
        # Lane-packed path: each 128-wide row holds k independent segments of
        # length d.  Segmented sum + broadcast back to every lane in one MXU
        # matmul against a block-diagonal 0/1 mask:
        #   s[:, j] = sum_{j' : seg(j') == seg(j)} pw[:, j']
        k, d = seg
        w = k * d
        row_seg = jax.lax.broadcasted_iota(jnp.int32, (w, w), 0) // d
        col_seg = jax.lax.broadcasted_iota(jnp.int32, (w, w), 1) // d
        mask = (row_seg == col_seg).astype(jnp.float32)
        s = jnp.dot(pw, mask, preferred_element_type=jnp.float32)    # (tr, w)

    if p == 1.0:
        norm = s
    elif p == 2.0:
        norm = jnp.sqrt(s)
    else:
        norm = s ** (1.0 / p)

    # Reciprocal on the EUP (exact, not approx, to preserve torch-level accuracy),
    # then a single multiply per element instead of a full-width divide.
    inv = pl.reciprocal(norm + 1e-12, approx=False)

    if x.dtype == jnp.float32:
        o_ref[...] = (xf * inv).astype(o_ref.dtype)
    else:
        # bf16/f16: keep the reduction in f32, but do the store-path scale in the
        # native dtype so no second full-width f32 tensor is live in VMEM/vregs.
        o_ref[...] = (x * inv.astype(x.dtype)).astype(o_ref.dtype)


def _vmem_budget_bytes() -> int:
    """Scoped-VMEM budget for this kernel: half the physical VMEM, capped at 64 MiB.

    v5e/v6e (128 MiB physical) -> 64 MiB scoped; v7x (64 MiB per TC) -> 32 MiB.
    Falls back to the most conservative value if the hardware query is unavailable.
    """
    phys = 64 * 1024 * 1024  # conservative fallback (v7x per-TC physical VMEM)
    try:
        phys = int(pltpu.get_tpu_info().vmem_capacity_bytes)
    except Exception:
        pass
    return min(phys // 2, 64 * 1024 * 1024)


def _num_tensorcores() -> int:
    """Best-effort TensorCores-per-chip (2 on v7x megacore, 1 on v5e/v6e)."""
    try:
        info = pltpu.get_tpu_info()
        for attr in ("num_cores", "core_count", "num_tensorcores", "tensorcores_per_chip"):
            v = getattr(info, attr, None)
            if v:
                return max(1, int(v))
    except Exception:
        pass
    return 1


def _pick_tile_rows(rows: int, width: int, dtype, vmem_budget: int, num_cores: int) -> int:
    """Row-tile size: big enough for the HBM-roofline regime, small enough that
    double-buffered in+out plus f32 intermediates fit the scoped-VMEM budget,
    and a multiple of the dtype's sublane packing."""
    itemsize = jnp.dtype(dtype).itemsize
    packing = max(1, 4 // itemsize)
    min_rows = 8 * packing            # 8 f32 / 16 bf16,f16 / 32 int8,fp8

    rows_padded = ((rows + min_rows - 1) // min_rows) * min_rows

    # Byte-based caps (no fixed row cap):
    #  * ~4 MiB of input per block: ~86% HBM-roofline regime and amortizes the
    #    ~0.35 us per-grid-step overhead.
    #  * VMEM cap: 2x in + 2x out (double-buffered) + ~4 f32-sized intermediates
    #    must fit the generation's scoped-VMEM budget with headroom.
    target_block_bytes = 4 * 1024 * 1024
    rows_by_target = target_block_bytes // max(1, width * itemsize)
    per_row_vmem = 4 * width * itemsize + 4 * width * 4
    rows_by_vmem = (vmem_budget * 3 // 4) // max(1, per_row_vmem)

    tr = min(rows_by_target, rows_by_vmem, rows_padded)
    tr = max(min_rows, (tr // min_rows) * min_rows)
    # TODO(synk): rows so long that a single min_rows block exceeds the VMEM
    # budget (earliest on v7x) need a tiled-D two-pass variant; not implemented.

    # Megacore (v7x): ensure >= 2 grid steps per TensorCore so BlockSpec
    # double-buffering actually overlaps DMA with compute on every core.
    # On 1-TC chips (v5e/v6e) skip the split -- it is pure per-step overhead.
    if num_cores > 1:
        target_steps = 2 * num_cores
        if rows_padded >= target_steps * min_rows:
            steps = -(-rows // tr)  # ceil div
            if steps < target_steps:
                tr = max(min_rows, (rows_padded // target_steps) // min_rows * min_rows)
    return tr


def lp_normalize(x: jax.Array, p: float = 2.0, tile_rows: int | None = None) -> jax.Array:
    """Lp-normalize x along its last dimension, matching LpModule(p).forward."""
    orig_shape = x.shape
    D = orig_shape[-1]
    x2 = x.reshape(-1, D)
    rows = x2.shape[0]

    # Lane-packing fast path: D < 128 and 128 % D == 0 -> fold k = 128 // D
    # consecutive rows into one 128-lane row (contiguous reshape, no HBM copy)
    # and do a segmented reduction in the kernel.  Keeps stores full-lane
    # (unmasked vst) instead of masked partial stores.  Falls back to the plain
    # path (correct, just masked stores) when rows don't pack evenly or D does
    # not divide 128.
    seg = None
    width = D
    if 0 < D < 128 and 128 % D == 0:
        k = 128 // D
        if rows >= k and rows % k == 0:
            x2 = x2.reshape(rows // k, k * D)
            rows = rows // k
            width = k * D
            seg = (k, D)

    vmem_budget = _vmem_budget_bytes()
    num_cores = _num_tensorcores()
    if tile_rows is None:
        tile_rows = _pick_tile_rows(rows, width, x2.dtype, vmem_budget, num_cores)

    # Ragged last block handled by Pallas (reads padded, writes clipped); no
    # HBM-side concatenate/slice copies.
    grid = (pl.cdiv(rows, tile_rows),)

    out = pl.pallas_call(
        functools.partial(_lp_norm_kernel, p=float(p), seg=seg),
        out_shape=jax.ShapeDtypeStruct((rows, width), x.dtype),
        grid=grid,
        # Last block dim equals the full (packed) array width, so any D is
        # legal; when width is a multiple of 128 the store path is lane-dense.
        in_specs=[pl.BlockSpec((tile_rows, width), lambda i: (i, 0))],
        out_specs=pl.BlockSpec((tile_rows, width), lambda i: (i, 0)),
        compiler_params=pltpu.CompilerParams(
            dimension_semantics=("parallel",),
            vmem_limit_bytes=int(vmem_budget),
        ),
    )(x2)

    return out.reshape(orig_shape)


if __name__ == "__main__":
    def ref_lp(xa, pa):
        xf = xa.astype(jnp.float32)
        norm = jnp.sum(jnp.abs(xf) ** pa, axis=-1, keepdims=True) ** (1.0 / pa)
        return xf / (norm + 1e-12)

    # 1) Plain lane-dense path: batch=2, seq=8, hidden=128, p=2 (LpModule(p=2)).
    x = jax.random.normal(jax.random.PRNGKey(0), (2, 8, 128), dtype=jnp.float32)
    y = jax.block_until_ready(lp_normalize(x, p=2.0))
    assert jnp.allclose(y, ref_lp(x, 2.0), atol=1e-5, rtol=1e-5), "mismatch (plain)"

    # 2) Ragged rows + last dim not a multiple of 128 (masked-store fallback path).
    x2 = jax.random.normal(jax.random.PRNGKey(1), (3, 5, 96), dtype=jnp.float32)
    y2 = jax.block_until_ready(lp_normalize(x2, p=2.0))
    assert jnp.allclose(y2, ref_lp(x2, 2.0), atol=1e-5, rtol=1e-5), "mismatch (ragged)"

    # 3) Lane-packed small-D path (D=64 -> 2 rows per 128-lane row), integer p=3.
    x3 = jax.random.normal(jax.random.PRNGKey(2), (4, 8, 64), dtype=jnp.float32)
    y3 = jax.block_until_ready(lp_normalize(x3, p=3.0))
    assert jnp.allclose(y3, ref_lp(x3, 3.0), atol=1e-5, rtol=1e-5), "mismatch (packed)"

    # 4) bf16 input: f32 reduction, native-dtype store path.
    x4 = jax.random.normal(jax.random.PRNGKey(3), (2, 16, 128), dtype=jnp.bfloat16)
    y4 = jax.block_until_ready(lp_normalize(x4, p=2.0))
    assert jnp.allclose(y4.astype(jnp.float32), ref_lp(x4, 2.0),
                        atol=3e-2, rtol=3e-2), "mismatch (bf16)"

    print("KERNEL_OK")
</pallas_src>

<mosaic_0001>
module attributes {stable_mosaic.version = 11 : i64} {
  func.func @_lp_norm_kernel(%arg0: i32, %arg1: memref<16x128xf32, #tpu.memory_space<vmem>>, %arg2: memref<16x128xf32, #tpu.memory_space<vmem>>) attributes {dimension_semantics = [#tpu.dimension_semantics<parallel>], iteration_bounds = array<i64: 1>, scalar_prefetch = 0 : i64, scratch_operands = 0 : i64, tpu.core_type = #tpu.core_type<tc>, window_params = [{transform_indices = @transform_0, window_bounds = array<i64: 16, 128>}, {transform_indices = @transform_1, window_bounds = array<i64: 16, 128>}]} {
    %c0 = arith.constant 0 : index
    %c0_0 = arith.constant 0 : index
    %0 = vector.load %arg1[%c0, %c0_0] : memref<16x128xf32, #tpu.memory_space<vmem>>, vector<16x128xf32>
    %1 = arith.mulf %0, %0 : vector<16x128xf32>
    %cst = arith.constant dense<0.000000e+00> : vector<16xf32>
    %2 = vector.multi_reduction <add>, %1, %cst [1] : vector<16x128xf32> to vector<16xf32>
    %3 = vector.shape_cast %2 : vector<16xf32> to vector<16x1xf32>
    %4 = math.sqrt %3 : vector<16x1xf32>
    %cst_1 = arith.constant 9.99999996E-13 : f32
    %5 = vector.broadcast %cst_1 : f32 to vector<16x1xf32>
    %6 = arith.addf %4, %5 : vector<16x1xf32>
    %7 = tpu.reciprocal %6 : vector<16x1xf32> -> vector<16x1xf32>
    %8 = vector.broadcast %7 : vector<16x1xf32> to vector<16x128xf32>
    %9 = arith.mulf %0, %8 : vector<16x128xf32>
    %c0_2 = arith.constant 0 : index
    %c0_3 = arith.constant 0 : index
    %10 = vector.load %arg2[%c0_2, %c0_3] : memref<16x128xf32, #tpu.memory_space<vmem>>, vector<16x128xf32>
    tpu.vector_store %arg2[%c0_2, %c0_3], %9 {strides = array<i32>} : memref<16x128xf32, #tpu.memory_space<vmem>>, vector<16x128xf32>,
    return
  }
  func.func @transform_0(%arg0: i32) -> (i32, i32) {
    %c0_i32 = arith.constant 0 : i32
    %c0_i32_0 = arith.constant 0 : i32
    return %arg0, %c0_i32 : i32, i32
  }
  func.func @transform_1(%arg0: i32) -> (i32, i32) {
    %c0_i32 = arith.constant 0 : i32
    %c0_i32_0 = arith.constant 0 : i32
    return %arg0, %c0_i32 : i32, i32
  }
}

</mosaic_0001>

<bundles_post_ra>
// kernel: tpu_custom_call.1
= control target key start
LH: loop header
LB: loop body
LE: loop exit
PB: predicated region body
PF: predicated region fallthrough
CT: control target
= control target key end

     0   :  { %6 = vsyncpa [#allocation3], 0  ;;  %s174_s0 = inlined_call_operand.hbm [shape: f32[16,128], index: 0, kind: input, shape index: {}]   ;;  %s175_s1 = inlined_call_operand.hbm [shape: f32[16,128], index: 1, kind: output, shape index: {}]  }
   0x1   :  { %7 = vsyncpa [#allocation4], 0  ;;  %s130_s6 = smov [#allocation2]   ;;  %s82_s10 = scalar_lea.hbm %s174_s0, 256 }
   0x2   :  { %s13_s7 = sshll.u32 %s130_s6, 4  ;;  %p83_p0 = scmp.ne.s32.totalorder %s174_s0, %s82_s10  ;;  %s14_s7 = int_to_ptr.vmem [resolvable:$true] %s13_s7 }
   0x3   :  { %p86_p1 = scmp.lt.u32.totalorder %s82_s10, %s174_s0 }
   0x5   :  { %p88_p2 = pnand %p86_p1, %p83_p0 }
   0x7   :  { %91 = shalt.err (!%p88_p2)
}
   0x8   :  { %s92_s15 = scalar_lea.vmem %s14_s7, 256  ;;  %p97_p4 = scmp.lt.s32.totalorder %s14_s7, %s14_s7 }
   0x9   :  { %p93_p3 = scmp.ne.s32.totalorder %s14_s7, %s92_s15  ;;  %p98_p5 = scmp.lt.s32.totalorder %s92_s15, %s92_s15 }
   0xb   :  { %p99_p6 = por %p98_p5, %p97_p4 }
   0xd   :  { %p100_p7 = pnand %p99_p6, %p93_p3 }
   0xf   :  { %103 = shalt.err (!%p100_p7)
}
  0x10   :  { %s131_s16 = smov 128   ;;  %s132_s17 = smov 8  }
  0x11   :  { %19 = dma.hbm_to_vmem [thread:$0]  %s174_s0, 256, %s14_s7, [#allocation3], %s131_s16, %s131_s16, %s132_s17  }
  0x12   :  { %126 = dma.done.wait [#allocation3], 256  }
  0x13   :  { %127 = vsyncadd [#allocation3], 4294967040  ;;  %v23_v0 = vld [vmem:[#allocation2] sm:$0xff]  ;;  %v24_v1 = vld [vmem:[#allocation2 + $0x8] sm:$0xff]  ;;  %s133_s0 = smov [#allocation5]  }
  0x14   :  { %v25_v2 = vmul.f32 %v23_v0, %v23_v0  ;;  %v26_v3 = vmul.f32 %v24_v1, %v24_v1  ;;  %s58_s20 = sshll.u32 %s133_s0, 4  ;;  %s59_s20 = int_to_ptr.vmem [resolvable:$true] %s58_s20 }
  0x15   :  { %s104_s21 = scalar_lea.vmem %s59_s20, 256  ;;  %p109_p9 = scmp.lt.s32.totalorder %s59_s20, %s59_s20 }
  0x16   :  { %27 = vadd.xlane.f32.xlu0 %v25_v2  ;;  %p105_p8 = scmp.ne.s32.totalorder %s59_s20, %s104_s21  ;;  %p110_p10 = scmp.lt.s32.totalorder %s104_s21, %s104_s21 }
  0x18   :  { %p111_p11 = por %p110_p10, %p109_p9 }
  0x1a   :  { %29 = vadd.xlane.f32.xlu0 %v26_v3  ;;  %p112_p12 = pnand %p111_p11, %p105_p8 }
  0xa3   :  { %v28_v4 = vpop.xlane.xlu0 %27 }
  0xa4   :  { %74 = vrsqrt.f32 %v28_v4  ;;  %vm33_vm0 = vcmp.eq.f32.partialorder %v28_v4, inf  ;;  %v36_v8 = vand.u32 2147483648, %v28_v4  ;;  %vm35_vm1 = vcmp.eq.f32.partialorder %v28_v4, 0.0 }
  0xa7   :  { %v30_v5 = vpop.xlane.xlu0 %29 }
  0xa8   :  { %76 = vrsqrt.f32 %v30_v5  ;;  %vm40_vm2 = vcmp.eq.f32.partialorder %v30_v5, inf  ;;  %v43_v14 = vand.u32 2147483648, %v30_v5  ;;  %vm42_vm3 = vcmp.eq.f32.partialorder %v30_v5, 0.0 }
  0xae   :  { %v75_v6 = vpop.eup %74 }
  0xaf   :  { %v32_v7 = vmul.f32 %v75_v6, %v28_v4 }
  0xb1   :  { %v34_v9 = vsel %vm33_vm0, %v28_v4, %v32_v7 }
  0xb2   :  { %v77_v10 = vpop.eup %76  ;;  %v37_v11 = vsel %vm35_vm1, %v36_v8, %v34_v9 }
  0xb3   :  { %v45_v12 = vadd.f32 1e-12, %v37_v11  ;;  %v39_v13 = vmul.f32 %v77_v10, %v30_v5 }
  0xb5   :  { %78 = vrcp.f32 %v45_v12  ;;  %v41_v15 = vsel %vm40_vm2, %v30_v5, %v39_v13 }
  0xb6   :  { %v44_v16 = vsel %vm42_vm3, %v43_v14, %v41_v15 }
  0xb7   :  { %v46_v17 = vadd.f32 1e-12, %v44_v16 }
  0xb9   :  { %80 = vrcp.f32 %v46_v17 }
  0xbf   :  { %v79_v18 = vpop.eup %78 }
  0xc0   :  { %v49_v19 = vmul.f32 %v79_v18, %v23_v0 }
  0xc2   :  { %51 = vst [vmem:[#allocation5] sm:$0xff] %v49_v19 }
  0xc3   :  { %v81_v20 = vpop.eup %80 }
  0xc4   :  { %v50_v21 = vmul.f32 %v81_v20, %v24_v1 }
  0xc6   :  { %52 = vst [vmem:[#allocation5 + $0x8] sm:$0xff] %v50_v21 }
  0xc7   :  { %115 = shalt.err (!%p112_p12)
}
  0xc8   :  { %s116_s24 = scalar_lea.hbm %s175_s1, 256 }
  0xc9   :  { %p117_p13 = scmp.ne.s32.totalorder %s175_s1, %s116_s24  ;;  %p120_p0 = scmp.lt.u32.totalorder %s116_s24, %s175_s1 }
  0xcb   :  { %p122_p1 = pnand %p120_p0, %p117_p13 }
  0xcd   :  { %125 = shalt.err (!%p122_p1)
}
  0xce   :  { %64 = dma.vmem_to_hbm [thread:$0]  %s59_s20, 256, %s175_s1, [#allocation4], %s131_s16, %s131_s16, %s132_s17  }
  0xcf   :  { %128 = dma.done.wait [#allocation4], 256  }
  0xd0   :  { %129 = vsyncadd [#allocation4], 4294967040 }
  0xd1   :  { %68 = vsyncpa [#allocation3], 1 }
  0xd2   :  { %69 = vsyncpa [#allocation4], 1 }

</bundles_post_ra>
